<compile_context>
chip_gen: v7x
topology: tpu7x:2x2x1
jax: 0.10.0
libtpu: 0.0.40
codegen_flags: <defaults>
</compile_context>

<pallas_src>
import functools

import jax
import jax.numpy as jnp
from jax import lax
from jax.experimental import pallas as pl
from jax.experimental.pallas import tpu as pltpu


def _round_up(x, m):
    return (x + m - 1) // m * m


def _pick_tile(padded_dim, cap=512):
    # padded_dim is a multiple of 128; pick the largest of {512,256,128} <= cap
    # that divides it exactly (no over-padded, pure-zero weight streaming).
    for c in (512, 256, 128):
        if c <= cap and padded_dim % c == 0:
            return c
    return 128


# --------------------------------- kernels ----------------------------------
def _noisy_linear_single_kernel(x_ref, wmu_ref, wsig_ref, ein_ref, eout_ref,
                                bmu_ref, bsig_ref, beps_ref, o_ref,
                                *, use_bf16_mxu: bool):
    # Whole (padded) layer fits in one block: no reduction grid, no branches.
    x = x_ref[...]                           # (tb, pad_in) f32
    xs = x * ein_ref[...]                    # scale by eps_in (f32 VPU, small)
    if use_bf16_mxu:
        x = x.astype(jnp.bfloat16)
        xs = xs.astype(jnp.bfloat16)
    mu = lax.dot_general(x, wmu_ref[...],
                         dimension_numbers=(((1,), (1,)), ((), ())),
                         preferred_element_type=jnp.float32)
    sig = lax.dot_general(xs, wsig_ref[...],
                          dimension_numbers=(((1,), (1,)), ((), ())),
                          preferred_element_type=jnp.float32)
    b = bmu_ref[...] + bsig_ref[...] * beps_ref[...]        # (1, pad_out)
    o_ref[...] = (mu + eout_ref[...] * sig + b).astype(o_ref.dtype)


def _noisy_linear_tiled_kernel(x_ref, wmu_ref, wsig_ref, ein_ref, eout_ref,
                               bmu_ref, bsig_ref, beps_ref, o_ref,
                               *, use_bf16_mxu: bool):
    k = pl.program_id(2)

    x = x_ref[...]                           # (tb, tk) f32
    xs = x * ein_ref[...]                    # (1, tk) broadcast over batch
    if use_bf16_mxu:
        x = x.astype(jnp.bfloat16)
        xs = xs.astype(jnp.bfloat16)

    # Contract last dim of both operands: (tb,tk) x (tn,tk) -> (tb,tn); no w.T.
    mu = lax.dot_general(x, wmu_ref[...],
                         dimension_numbers=(((1,), (1,)), ((), ())),
                         preferred_element_type=jnp.float32)
    sig = lax.dot_general(xs, wsig_ref[...],
                          dimension_numbers=(((1,), (1,)), ((), ())),
                          preferred_element_type=jnp.float32)
    contrib = mu + eout_ref[...] * sig       # (tb, tn) f32

    # Output block index (i, j) is constant over k -> accumulate directly into
    # o_ref (f32); bias is folded into the k==0 write.
    @pl.when(k == 0)
    def _init():
        b = bmu_ref[...] + bsig_ref[...] * beps_ref[...]    # (1, tn)
        o_ref[...] = contrib + b

    @pl.when(k > 0)
    def _accumulate():
        o_ref[...] += contrib


# ------------------------------ call wrappers --------------------------------
@functools.partial(jax.jit, static_argnames=("out_features", "use_bf16_mxu"))
def _noisy_linear_padded(x, wmu, wsig, ein, eout, bmu, bsig, beps,
                         *, out_features, use_bf16_mxu):
    B, in_f = x.shape
    pad_out, pad_in = wmu.shape

    # Batch tile: as big as possible (weights are re-streamed per batch tile).
    if B <= 512:
        tb = _round_up(B, 16 if use_bf16_mxu else 8)
        pad_b = tb
    else:
        tb = 256
        pad_b = _round_up(B, tb)

    # Only x is padded per call (weights were padded once at prep time).
    xp = jnp.pad(x, ((0, pad_b - B), (0, pad_in - in_f)))

    vmem_limit = 32 * 1024 * 1024

    if pad_in <= 512 and pad_out <= 512:
        # Small (RL-sized) layer: single block over features, batch-only grid.
        kernel = functools.partial(_noisy_linear_single_kernel,
                                   use_bf16_mxu=use_bf16_mxu)
        out = pl.pallas_call(
            kernel,
            out_shape=jax.ShapeDtypeStruct((pad_b, pad_out), jnp.float32),
            grid_spec=pltpu.PrefetchScalarGridSpec(
                num_scalar_prefetch=0,
                grid=(pad_b // tb,),
                in_specs=[
                    pl.BlockSpec((tb, pad_in), lambda i: (i, 0)),        # x
                    pl.BlockSpec((pad_out, pad_in), lambda i: (0, 0)),   # wmu
                    pl.BlockSpec((pad_out, pad_in), lambda i: (0, 0)),   # wsig
                    pl.BlockSpec((1, pad_in), lambda i: (0, 0)),         # eps_in
                    pl.BlockSpec((1, pad_out), lambda i: (0, 0)),        # eps_out
                    pl.BlockSpec((1, pad_out), lambda i: (0, 0)),        # bias_mu
                    pl.BlockSpec((1, pad_out), lambda i: (0, 0)),        # bias_sigma
                    pl.BlockSpec((1, pad_out), lambda i: (0, 0)),        # bias_eps
                ],
                out_specs=pl.BlockSpec((tb, pad_out), lambda i: (i, 0)),
            ),
            compiler_params=pltpu.CompilerParams(
                dimension_semantics=("parallel",),
                vmem_limit_bytes=vmem_limit,
            ),
        )(xp, wmu, wsig, ein, eout, bmu, bsig, beps)
    else:
        tn = _pick_tile(pad_out, cap=512)
        tk = _pick_tile(pad_in, cap=512)
        kernel = functools.partial(_noisy_linear_tiled_kernel,
                                   use_bf16_mxu=use_bf16_mxu)
        grid = (pad_b // tb, pad_out // tn, pad_in // tk)
        out = pl.pallas_call(
            kernel,
            out_shape=jax.ShapeDtypeStruct((pad_b, pad_out), jnp.float32),
            grid_spec=pltpu.PrefetchScalarGridSpec(
                num_scalar_prefetch=0,
                grid=grid,
                in_specs=[
                    pl.BlockSpec((tb, tk), lambda i, j, k: (i, k)),   # x
                    pl.BlockSpec((tn, tk), lambda i, j, k: (j, k)),   # wmu
                    pl.BlockSpec((tn, tk), lambda i, j, k: (j, k)),   # wsig
                    pl.BlockSpec((1, tk), lambda i, j, k: (0, k)),    # eps_in
                    pl.BlockSpec((1, tn), lambda i, j, k: (0, j)),    # eps_out
                    pl.BlockSpec((1, tn), lambda i, j, k: (0, j)),    # bias_mu
                    pl.BlockSpec((1, tn), lambda i, j, k: (0, j)),    # bias_sigma
                    pl.BlockSpec((1, tn), lambda i, j, k: (0, j)),    # bias_eps
                ],
                out_specs=pl.BlockSpec((tb, tn), lambda i, j, k: (i, j)),
            ),
            compiler_params=pltpu.CompilerParams(
                dimension_semantics=("parallel", "parallel", "arbitrary"),
                vmem_limit_bytes=vmem_limit,
            ),
        )(xp, wmu, wsig, ein, eout, bmu, bsig, beps)

    return out[:B, :out_features]


def prep_noisy_linear_params(weight_mu, weight_sigma, eps_out, eps_in,
                             bias_mu, bias_sigma, bias_epsilon,
                             *, use_bf16_mxu=True):
    """One-time parameter prep: 128-pad and (optionally) bf16-cast the weights.

    Done once per reset_noise()/parameter update, NOT per forward call, so the
    mem-bound kernel streams half the weight bytes and the per-call jit only
    pads x.
    """
    out_f, in_f = weight_mu.shape
    pad_in = _round_up(in_f, 128)
    pad_out = _round_up(out_f, 128)
    w_dtype = jnp.bfloat16 if use_bf16_mxu else jnp.float32

    def pad2(a):
        return jnp.pad(a, ((0, pad_out - out_f), (0, pad_in - in_f)))

    wmu = pad2(weight_mu.astype(jnp.float32)).astype(w_dtype)
    wsig = pad2(weight_sigma.astype(jnp.float32)).astype(w_dtype)
    ein = jnp.pad(eps_in.astype(jnp.float32), (0, pad_in - in_f)).reshape(1, pad_in)
    eout = jnp.pad(eps_out.astype(jnp.float32), (0, pad_out - out_f)).reshape(1, pad_out)
    bmu = jnp.pad(bias_mu.astype(jnp.float32), (0, pad_out - out_f)).reshape(1, pad_out)
    bsig = jnp.pad(bias_sigma.astype(jnp.float32), (0, pad_out - out_f)).reshape(1, pad_out)
    beps = jnp.pad(bias_epsilon.astype(jnp.float32), (0, pad_out - out_f)).reshape(1, pad_out)

    return dict(wmu=wmu, wsig=wsig, ein=ein, eout=eout,
                bmu=bmu, bsig=bsig, beps=beps,
                out_features=out_f, use_bf16_mxu=use_bf16_mxu)


def noisy_linear(x, prepped):
    """NoisyLinear.forward: y = x @ (mu + sigma*eps).T + (bmu + bsig*beps)."""
    return _noisy_linear_padded(
        x, prepped["wmu"], prepped["wsig"], prepped["ein"], prepped["eout"],
        prepped["bmu"], prepped["bsig"], prepped["beps"],
        out_features=prepped["out_features"],
        use_bf16_mxu=prepped["use_bf16_mxu"])


# ----------------------------- init (mirrors PyTorch) ------------------------
def _scale_noise(key, size):
    # torch: x.sign() * x.abs().sqrt() with x ~ N(0, 1)
    x = jax.random.normal(key, (size,), dtype=jnp.float32)
    return jnp.sign(x) * jnp.sqrt(jnp.abs(x))


def init_noisy_linear_params(key, in_features, out_features, sigma_init=0.5):
    """Parameter/noise init mirroring NoisyLinear.__init__ + reset_noise()."""
    # TODO(synk): torch RNG streams are not reproduced bit-identically; the
    # distributions (uniform mu, constant sigma, factorised scaled noise) match.
    k_wmu, k_bmu, k_ein, k_eout = jax.random.split(key, 4)
    mu_range = 1.0 / jnp.sqrt(jnp.float32(in_features))

    weight_mu = jax.random.uniform(
        k_wmu, (out_features, in_features), jnp.float32, -mu_range, mu_range)
    weight_sigma = jnp.full((out_features, in_features),
                            sigma_init / jnp.sqrt(jnp.float32(in_features)),
                            dtype=jnp.float32)
    bias_mu = jax.random.uniform(
        k_bmu, (out_features,), jnp.float32, -mu_range, mu_range)
    bias_sigma = jnp.full((out_features,),
                          sigma_init / jnp.sqrt(jnp.float32(out_features)),
                          dtype=jnp.float32)

    # reset_noise(): factorised noise, kept as rank-1 factors for the kernel.
    eps_in = _scale_noise(k_ein, in_features)
    eps_out = _scale_noise(k_eout, out_features)
    bias_epsilon = eps_out

    return dict(weight_mu=weight_mu, weight_sigma=weight_sigma,
                eps_in=eps_in, eps_out=eps_out,
                bias_mu=bias_mu, bias_sigma=bias_sigma,
                bias_epsilon=bias_epsilon)


def _reference(x, p):
    # Dense reference exactly as the PyTorch forward sees it.
    weight_epsilon = jnp.outer(p["eps_out"], p["eps_in"])
    w = p["weight_mu"] + p["weight_sigma"] * weight_epsilon
    b = p["bias_mu"] + p["bias_sigma"] * p["bias_epsilon"]
    return jnp.dot(x, w.T, precision=jax.lax.Precision.HIGHEST) + b


if __name__ == "__main__":
    key = jax.random.PRNGKey(0)
    k_param, k_x, k_param2, k_x2 = jax.random.split(key, 4)

    # --- test 1: small RL-sized layer -> single-block kernel path ------------
    batch, in_features, out_features = 8, 32, 64
    params = init_noisy_linear_params(k_param, in_features, out_features)
    x = jax.random.normal(k_x, (batch, in_features), dtype=jnp.float32)
    y_ref = _reference(x, params)

    # bf16 weight-streaming / bf16-MXU path (default).
    prepped_bf16 = prep_noisy_linear_params(
        params["weight_mu"], params["weight_sigma"],
        params["eps_out"], params["eps_in"],
        params["bias_mu"], params["bias_sigma"], params["bias_epsilon"],
        use_bf16_mxu=True)
    y = noisy_linear(x, prepped_bf16)
    jax.block_until_ready(y)
    assert y.shape == (batch, out_features)
    assert jnp.allclose(y, y_ref, atol=2e-2, rtol=2e-2), "small bf16 mismatch"

    # f32 fallback path.
    prepped_f32 = prep_noisy_linear_params(
        params["weight_mu"], params["weight_sigma"],
        params["eps_out"], params["eps_in"],
        params["bias_mu"], params["bias_sigma"], params["bias_epsilon"],
        use_bf16_mxu=False)
    y32 = noisy_linear(x, prepped_f32)
    jax.block_until_ready(y32)
    assert jnp.allclose(y32, y_ref, atol=1e-4, rtol=1e-4), "small f32 mismatch"

    # --- test 2: larger layer -> tiled kernel, multi-step k reduction --------
    b2, in2, out2 = 64, 1024, 256
    params2 = init_noisy_linear_params(k_param2, in2, out2)
    x2 = jax.random.normal(k_x2, (b2, in2), dtype=jnp.float32)
    prepped2 = prep_noisy_linear_params(
        params2["weight_mu"], params2["weight_sigma"],
        params2["eps_out"], params2["eps_in"],
        params2["bias_mu"], params2["bias_sigma"], params2["bias_epsilon"],
        use_bf16_mxu=True)
    y2 = noisy_linear(x2, prepped2)
    jax.block_until_ready(y2)
    y2_ref = _reference(x2, params2)
    assert y2.shape == (b2, out2)
    assert jnp.allclose(y2, y2_ref, atol=2e-2, rtol=2e-2), "tiled mismatch"

    print("KERNEL_OK")
</pallas_src>

<mosaic_0001>
module attributes {stable_mosaic.version = 11 : i64} {
  func.func @_noisy_linear_single_kernel(%arg0: i32, %arg1: memref<16x128xf32, #tpu.memory_space<vmem>>, %arg2: memref<128x128xbf16, #tpu.memory_space<vmem>>, %arg3: memref<128x128xbf16, #tpu.memory_space<vmem>>, %arg4: memref<1x128xf32, #tpu.memory_space<vmem>>, %arg5: memref<1x128xf32, #tpu.memory_space<vmem>>, %arg6: memref<1x128xf32, #tpu.memory_space<vmem>>, %arg7: memref<1x128xf32, #tpu.memory_space<vmem>>, %arg8: memref<1x128xf32, #tpu.memory_space<vmem>>, %arg9: memref<16x128xf32, #tpu.memory_space<vmem>>) attributes {dimension_semantics = [#tpu.dimension_semantics<parallel>], iteration_bounds = array<i64: 1>, scalar_prefetch = 0 : i64, scratch_operands = 0 : i64, tpu.core_type = #tpu.core_type<tc>, window_params = [{transform_indices = @transform_0, window_bounds = array<i64: 16, 128>}, {pipeline_mode = #tpu.pipeline_mode<synchronous>, transform_indices = @transform_1, window_bounds = array<i64: 128, 128>}, {pipeline_mode = #tpu.pipeline_mode<synchronous>, transform_indices = @transform_2, window_bounds = array<i64: 128, 128>}, {pipeline_mode = #tpu.pipeline_mode<synchronous>, transform_indices = @transform_3, window_bounds = array<i64: 1, 128>}, {pipeline_mode = #tpu.pipeline_mode<synchronous>, transform_indices = @transform_4, window_bounds = array<i64: 1, 128>}, {pipeline_mode = #tpu.pipeline_mode<synchronous>, transform_indices = @transform_5, window_bounds = array<i64: 1, 128>}, {pipeline_mode = #tpu.pipeline_mode<synchronous>, transform_indices = @transform_6, window_bounds = array<i64: 1, 128>}, {pipeline_mode = #tpu.pipeline_mode<synchronous>, transform_indices = @transform_7, window_bounds = array<i64: 1, 128>}, {transform_indices = @transform_8, window_bounds = array<i64: 16, 128>}]} {
    %c0 = arith.constant 0 : index
    %c0_0 = arith.constant 0 : index
    %0 = vector.load %arg1[%c0, %c0_0] : memref<16x128xf32, #tpu.memory_space<vmem>>, vector<16x128xf32>
    %c0_1 = arith.constant 0 : index
    %c0_2 = arith.constant 0 : index
    %1 = vector.load %arg4[%c0_1, %c0_2] : memref<1x128xf32, #tpu.memory_space<vmem>>, vector<1x128xf32>
    %2 = vector.broadcast %1 : vector<1x128xf32> to vector<16x128xf32>
    %3 = arith.mulf %0, %2 : vector<16x128xf32>
    %4 = arith.truncf %0 : vector<16x128xf32> to vector<16x128xbf16>
    %5 = arith.truncf %3 : vector<16x128xf32> to vector<16x128xbf16>
    %c0_3 = arith.constant 0 : index
    %c0_4 = arith.constant 0 : index
    %6 = vector.load %arg2[%c0_3, %c0_4] : memref<128x128xbf16, #tpu.memory_space<vmem>>, vector<128x128xbf16>
    %cst = arith.constant dense<0.000000e+00> : vector<16x128xf32>
    %7 = tpu.matmul %4, %6, %cst {dimension_numbers = #tpu.dot_dimension_numbers<[1], [1], [0], [0], [0, 0, 1, 0], [], []>} : vector<16x128xbf16>, vector<128x128xbf16>, vector<16x128xf32> -> vector<16x128xf32>
    %c0_5 = arith.constant 0 : index
    %c0_6 = arith.constant 0 : index
    %8 = vector.load %arg3[%c0_5, %c0_6] : memref<128x128xbf16, #tpu.memory_space<vmem>>, vector<128x128xbf16>
    %cst_7 = arith.constant dense<0.000000e+00> : vector<16x128xf32>
    %9 = tpu.matmul %5, %8, %cst_7 {dimension_numbers = #tpu.dot_dimension_numbers<[1], [1], [0], [0], [0, 0, 1, 0], [], []>} : vector<16x128xbf16>, vector<128x128xbf16>, vector<16x128xf32> -> vector<16x128xf32>
    %c0_8 = arith.constant 0 : index
    %c0_9 = arith.constant 0 : index
    %10 = vector.load %arg6[%c0_8, %c0_9] : memref<1x128xf32, #tpu.memory_space<vmem>>, vector<1x128xf32>
    %c0_10 = arith.constant 0 : index
    %c0_11 = arith.constant 0 : index
    %11 = vector.load %arg7[%c0_10, %c0_11] : memref<1x128xf32, #tpu.memory_space<vmem>>, vector<1x128xf32>
    %c0_12 = arith.constant 0 : index
    %c0_13 = arith.constant 0 : index
    %12 = vector.load %arg8[%c0_12, %c0_13] : memref<1x128xf32, #tpu.memory_space<vmem>>, vector<1x128xf32>
    %13 = arith.mulf %11, %12 : vector<1x128xf32>
    %14 = arith.addf %10, %13 : vector<1x128xf32>
    %c0_14 = arith.constant 0 : index
    %c0_15 = arith.constant 0 : index
    %15 = vector.load %arg5[%c0_14, %c0_15] : memref<1x128xf32, #tpu.memory_space<vmem>>, vector<1x128xf32>
    %16 = vector.broadcast %15 : vector<1x128xf32> to vector<16x128xf32>
    %17 = arith.mulf %16, %9 : vector<16x128xf32>
    %18 = arith.addf %7, %17 : vector<16x128xf32>
    %19 = vector.broadcast %14 : vector<1x128xf32> to vector<16x128xf32>
    %20 = arith.addf %18, %19 : vector<16x128xf32>
    %c0_16 = arith.constant 0 : index
    %c0_17 = arith.constant 0 : index
    %21 = vector.load %arg9[%c0_16, %c0_17] : memref<16x128xf32, #tpu.memory_space<vmem>>, vector<16x128xf32>
    tpu.vector_store %arg9[%c0_16, %c0_17], %20 {strides = array<i32>} : memref<16x128xf32, #tpu.memory_space<vmem>>, vector<16x128xf32>,
    return
  }
  func.func @transform_0(%arg0: i32) -> (i32, i32) {
    %c0_i32 = arith.constant 0 : i32
    %c0_i32_0 = arith.constant 0 : i32
    return %arg0, %c0_i32 : i32, i32
  }
  func.func @transform_1(%arg0: i32) -> (i32, i32) {
    %c0_i32 = arith.constant 0 : i32
    %c0_i32_0 = arith.constant 0 : i32
    %c0_i32_1 = arith.constant 0 : i32
    return %c0_i32, %c0_i32_0 : i32, i32
  }
  func.func @transform_2(%arg0: i32) -> (i32, i32) {
    %c0_i32 = arith.constant 0 : i32
    %c0_i32_0 = arith.constant 0 : i32
    %c0_i32_1 = arith.constant 0 : i32
    return %c0_i32, %c0_i32_0 : i32, i32
  }
  func.func @transform_3(%arg0: i32) -> (i32, i32) {
    %c0_i32 = arith.constant 0 : i32
    %c0_i32_0 = arith.constant 0 : i32
    %c0_i32_1 = arith.constant 0 : i32
    return %c0_i32, %c0_i32_0 : i32, i32
  }
  func.func @transform_4(%arg0: i32) -> (i32, i32) {
    %c0_i32 = arith.constant 0 : i32
    %c0_i32_0 = arith.constant 0 : i32
    %c0_i32_1 = arith.constant 0 : i32
    return %c0_i32, %c0_i32_0 : i32, i32
  }
  func.func @transform_5(%arg0: i32) -> (i32, i32) {
    %c0_i32 = arith.constant 0 : i32
    %c0_i32_0 = arith.constant 0 : i32
    %c0_i32_1 = arith.constant 0 : i32
    return %c0_i32, %c0_i32_0 : i32, i32
  }
  func.func @transform_6(%arg0: i32) -> (i32, i32) {
    %c0_i32 = arith.constant 0 : i32
    %c0_i32_0 = arith.constant 0 : i32
    %c0_i32_1 = arith.constant 0 : i32
    return %c0_i32, %c0_i32_0 : i32, i32
  }
  func.func @transform_7(%arg0: i32) -> (i32, i32) {
    %c0_i32 = arith.constant 0 : i32
    %c0_i32_0 = arith.constant 0 : i32
    %c0_i32_1 = arith.constant 0 : i32
    return %c0_i32, %c0_i32_0 : i32, i32
  }
  func.func @transform_8(%arg0: i32) -> (i32, i32) {
    %c0_i32 = arith.constant 0 : i32
    %c0_i32_0 = arith.constant 0 : i32
    return %arg0, %c0_i32 : i32, i32
  }
}

</mosaic_0001>

<bundles_post_ra>
// kernel: _noisy_linear_padded.1
= control target key start
LH: loop header
LB: loop body
LE: loop exit
PB: predicated region body
PF: predicated region fallthrough
CT: control target
= control target key end

     0   :  { %13 = vsyncpa [#allocation3], 0  ;;  %s559_s0 = inlined_call_operand.vmem [shape: f32[16,128], index: 0, kind: input, shape index: {}]   ;;  %s560_s1 = inlined_call_operand.hbm [shape: bf16[128,128], index: 1, kind: input, shape index: {}]   ;;  %s561_s2 = inlined_call_operand.hbm [shape: bf16[128,128], index: 2, kind: input, shape index: {}]   ;;  %s562_s3 = inlined_call_operand.vmem [shape: f32[1,128], index: 3, kind: input, shape index: {}]   ;;  %s563_s4 = inlined_call_operand.vmem [shape: f32[1,128], index: 4, kind: input, shape index: {}]   ;;  %s564_s5 = inlined_call_operand.vmem [shape: f32[1,128], index: 5, kind: input, shape index: {}]   ;;  %s565_s6 = inlined_call_operand.vmem [shape: f32[1,128], index: 6, kind: input, shape index: {}]   ;;  %s566_s7 = inlined_call_operand.vmem [shape: f32[1,128], index: 7, kind: input, shape index: {}]   ;;  %s567_s8 = inlined_call_operand.vmem [shape: f32[16,128], index: 8, kind: output, shape index: {}]  }
   0x1   :  { %14 = vsyncpa [#allocation5], 0  ;;  %s457_s27 = smov [#allocation2]   ;;  %s409_s9 = scalar_lea.hbm %s560_s1, 1024 }
   0x2   :  { %s22_s28 = sshll.u32 %s457_s27, 4  ;;  %p410_p0 = scmp.ne.s32.totalorder %s560_s1, %s409_s9  ;;  %s23_s28 = int_to_ptr.vmem [resolvable:$true] %s22_s28 }
   0x3   :  { %p413_p1 = scmp.lt.u32.totalorder %s409_s9, %s560_s1 }
   0x5   :  { %p415_p2 = pnand %p413_p1, %p410_p0 }
   0x7   :  { %418 = shalt.err (!%p415_p2)
}
   0x8   :  { %s419_s14 = scalar_lea.vmem %s23_s28, 1024  ;;  %p424_p4 = scmp.lt.s32.totalorder %s23_s28, %s23_s28 }
   0x9   :  { %p420_p3 = scmp.ne.s32.totalorder %s23_s28, %s419_s14  ;;  %p425_p5 = scmp.lt.s32.totalorder %s419_s14, %s419_s14 }
   0xb   :  { %p426_p6 = por %p425_p5, %p424_p4 }
   0xd   :  { %p427_p7 = pnand %p426_p6, %p420_p3 }
   0xf   :  { %430 = shalt.err (!%p427_p7)
}
  0x10   :  { %s458_s15 = smov 64   ;;  %s459_s16 = smov 4  }
  0x11   :  { %28 = dma.hbm_to_vmem [thread:$0]  %s560_s1, 1024, %s23_s28, [#allocation3], %s458_s15, %s458_s15, %s459_s16  }
  0x12   :  { %s460_s19 = smov [#allocation4]   ;;  %s431_s23 = scalar_lea.hbm %s561_s2, 1024 }
  0x13   :  { %s34_s20 = sshll.u32 %s460_s19, 4  ;;  %p432_p8 = scmp.ne.s32.totalorder %s561_s2, %s431_s23  ;;  %s35_s20 = int_to_ptr.vmem [resolvable:$true] %s34_s20 }
  0x14   :  { %p435_p9 = scmp.lt.u32.totalorder %s431_s23, %s561_s2 }
  0x16   :  { %p437_p10 = pnand %p435_p9, %p432_p8 }
  0x18   :  { %440 = shalt.err (!%p437_p10)
}
  0x19   :  { %s441_s29 = scalar_lea.vmem %s35_s20, 1024  ;;  %p446_p12 = scmp.lt.s32.totalorder %s35_s20, %s35_s20 }
  0x1a   :  { %p442_p11 = scmp.ne.s32.totalorder %s35_s20, %s441_s29  ;;  %p447_p13 = scmp.lt.s32.totalorder %s441_s29, %s441_s29 }
  0x1c   :  { %p448_p0 = por %p447_p13, %p446_p12 }
  0x1e   :  { %p449_p1 = pnand %p448_p0, %p442_p11 }
  0x20   :  { %452 = shalt.err (!%p449_p1)
}
  0x21   :  { %40 = dma.hbm_to_vmem [thread:$0]  %s561_s2, 1024, %s35_s20, [#allocation5], %s458_s15, %s458_s15, %s459_s16  }
  0x22   :  { %453 = dma.done.wait [#allocation3], 1024  }
  0x23   :  { %454 = vsyncadd [#allocation3], 4294966272 }
  0x24   :  { %455 = dma.done.wait [#allocation5], 1024  }
  0x25   :  { %456 = vsyncadd [#allocation5], 4294966272  ;;  %v461_v0 = vmov 0.0   ;;  %vm462_vm0 = vmmov 0   ;;  %v393_v1 = vld [vmem:[#allocation4] sm:$0xff]   ;;  %v395_v3 = vld [vmem:[#allocation4 + $0x8] sm:$0xff]   ;;  %v296_v24 = vlaneseq }
  0x26   :  { %347 = vmatprep.subr.bf16.mxu0 %v461_v0  ;;  %367 = vmatprep.subr.bf16.mxu1 %v461_v0  ;;  %v394_v2 = vld [vmem:[#allocation2] sm:$0xff]   ;;  %v396_v4 = vld [vmem:[#allocation2 + $0x8] sm:$0xff]   ;;  %v397_v5 = vld [vmem:[#allocation4 + $0x10] sm:$0xff]  }
  0x27   :  { %363 = vmatprep.mubr.msk.bf16.mxu0 %vm462_vm0, %v461_v0  ;;  %383 = vmatprep.mubr.msk.bf16.mxu1 %vm462_vm0, %v461_v0  ;;  %v398_v6 = vld [vmem:[#allocation2 + $0x10] sm:$0xff]   ;;  %v399_v7 = vld [vmem:[#allocation4 + $0x18] sm:$0xff]   ;;  %v401_v9 = vld [vmem:[#allocation4 + $0x20] sm:$0xff]   ;;  %v297_v28 = vshrl.u32 %v296_v24, 7 }
  0x28   :  { %348 = vmatpush3.bf16.xpose.msra.mxu0 %v393_v1  ;;  %368 = vmatpush3.bf16.xpose.msra.mxu1 %v394_v2  ;;  %v400_v8 = vld [vmem:[#allocation2 + $0x18] sm:$0xff]   ;;  %v402_v10 = vld [vmem:[#allocation2 + $0x20] sm:$0xff]   ;;  %v403_v11 = vld [vmem:[#allocation4 + $0x28] sm:$0xff]  }
  0x29   :  { %349 = vmatprep.subr.bf16.mxu0 %v461_v0  ;;  %369 = vmatprep.subr.bf16.mxu1 %v461_v0  ;;  %v404_v12 = vld [vmem:[#allocation2 + $0x28] sm:$0xff]   ;;  %v405_v13 = vld [vmem:[#allocation4 + $0x30] sm:$0xff]   ;;  %v407_v15 = vld [vmem:[#allocation4 + $0x38] sm:$0xff]   ;;  %v298_v31 = vsub.s32 0, %v297_v28 }
  0x2a   :  { %v406_v14 = vld [vmem:[#allocation2 + $0x30] sm:$0xff]   ;;  %v58_v16 = vld [vmem:[%s559_s0] sm:$0xff]  ;;  %v59_v17 = vld [vmem:[%s559_s0 + $0x8] sm:$0xff] }
  0x2b   :  { %v311_v18 = vld [vmem:[%s562_s3] ss:$0 sm:$0xff]  ;;  %v408_v19 = vld [vmem:[#allocation2 + $0x38] sm:$0xff]   ;;  %v69_v23 = vpack.c.bf16 %v59_v17, %v58_v16 }
  0x2c   :  { %v67_v20 = vmul.f32 %v311_v18, %v58_v16  ;;  %v68_v21 = vmul.f32 %v311_v18, %v59_v17  ;;  %v193_v25 = vld [vmem:[%s565_s6] sm:$0x1] }
  0x2d   :  { %v194_v26 = vld [vmem:[%s566_s7] sm:$0x1] }
  0x2e   :  { %v70_v22 = vpack.c.bf16 %v68_v21, %v67_v20  ;;  %v195_v27 = vmul.f32 %v194_v26, %v193_v25  ;;  %v192_v29 = vld [vmem:[%s564_s5] sm:$0x1] }
  0x2f   :  { %v320_v32 = vld [vmem:[%s563_s4] ss:$0 sm:$0xff] }
  0x30   :  { %350 = vmatpush3.bf16.xpose.msra.mxu0 %v395_v3  ;;  %370 = vmatpush3.bf16.xpose.msra.mxu1 %v396_v4  ;;  %v196_v30 = vadd.f32 %v195_v27, %v192_v29 }
  0x31   :  { %351 = vmatprep.subr.bf16.mxu0 %v461_v0  ;;  %371 = vmatprep.subr.bf16.mxu1 %v461_v0 }
  0x32   :  { %v299_v36 = vrot.slane %v196_v30, %v298_v31 }
  0x38   :  { %352 = vmatpush3.bf16.xpose.msra.mxu0 %v397_v5  ;;  %372 = vmatpush3.bf16.xpose.msra.mxu1 %v398_v6 }
  0x39   :  { %353 = vmatprep.subr.bf16.mxu0 %v461_v0  ;;  %373 = vmatprep.subr.bf16.mxu1 %v461_v0 }
  0x40   :  { %354 = vmatpush3.bf16.xpose.msra.mxu0 %v399_v7  ;;  %374 = vmatpush3.bf16.xpose.msra.mxu1 %v400_v8 }
  0x41   :  { %355 = vmatprep.subr.bf16.mxu0 %v461_v0  ;;  %375 = vmatprep.subr.bf16.mxu1 %v461_v0 }
  0x48   :  { %356 = vmatpush3.bf16.xpose.msra.mxu0 %v401_v9  ;;  %376 = vmatpush3.bf16.xpose.msra.mxu1 %v402_v10 }
  0x49   :  { %357 = vmatprep.subr.bf16.mxu0 %v461_v0  ;;  %377 = vmatprep.subr.bf16.mxu1 %v461_v0 }
  0x50   :  { %358 = vmatpush3.bf16.xpose.msra.mxu0 %v403_v11  ;;  %378 = vmatpush3.bf16.xpose.msra.mxu1 %v404_v12 }
  0x51   :  { %359 = vmatprep.subr.bf16.mxu0 %v461_v0  ;;  %379 = vmatprep.subr.bf16.mxu1 %v461_v0 }
  0x58   :  { %360 = vmatpush3.bf16.xpose.msra.mxu0 %v405_v13  ;;  %380 = vmatpush3.bf16.xpose.msra.mxu1 %v406_v14 }
  0x59   :  { %361 = vmatprep.subr.bf16.mxu0 %v461_v0  ;;  %381 = vmatprep.subr.bf16.mxu1 %v461_v0 }
  0x60   :  { %362 = vmatpush3.bf16.xpose.msra.mxu0 %v407_v15  ;;  %382 = vmatpush3.bf16.xpose.msra.mxu1 %v408_v19 }
  0x67   :  { %364 = vmatmul.mubr.bf16.vlgmr.msra.gmra.mrb[0].mxu0 %v70_v22  ;;  %384 = vmatmul.mubr.bf16.vlgmr.msra.gmra.mrb[0].mxu1 %v69_v23 }
 0x13a   :  { %v185_v33 = vpop.f32.mrb[0].mxu0  ;;  %v288_v35 = vpop.f32.mrb[0].mxu1 }
 0x13b   :  { %v204_v34 = vmul.f32 %v320_v32, %v185_v33  ;;  %v365_v37 = vpop.f32.mrb[1].mxu0  ;;  %v385_v38 = vpop.f32.mrb[1].mxu1 }
 0x13c   :  { %v188_v39 = vpop.f32.mrb[2].mxu0  ;;  %v291_v42 = vpop.f32.mrb[2].mxu1 }
 0x13d   :  { %v289_v40 = vadd.f32 %v288_v35, %v204_v34  ;;  %v205_v41 = vmul.f32 %v320_v32, %v188_v39  ;;  %v366_v43 = vpop.f32.mrb[3].mxu0  ;;  %v386_v44 = vpop.f32.mrb[3].mxu1 }
 0x13f   :  { %v301_v45 = vadd.f32 %v299_v36, %v289_v40  ;;  %v292_v46 = vadd.f32 %v291_v42, %v205_v41 }
 0x141   :  { %303 = vst [vmem:[%s567_s8] sm:$0xff] %v301_v45  ;;  %v302_v47 = vadd.f32 %v299_v36, %v292_v46 }
 0x143   :  { %304 = vst [vmem:[%s567_s8 + $0x8] sm:$0xff] %v302_v47 }
 0x144   :  { %309 = vsyncpa [#allocation3], 1 }
 0x145   :  { %310 = vsyncpa [#allocation5], 1 }

</bundles_post_ra>
